<compile_context>
chip_gen: v7x
topology: tpu7x:2x2x1
jax: 0.10.0
libtpu: 0.0.40
codegen_flags: <defaults>
</compile_context>

<pallas_src>
import jax
import jax.numpy as jnp
from jax.experimental import pallas as pl
from jax.experimental.pallas import tpu as pltpu


# ----------------------------------------------------------------------------
# Fused kernel: one image per grid step
# ----------------------------------------------------------------------------
def _lightconv3x3_kernel(x_ref, b_ref, s_ref, bias_ref, o_ref):
    """Fused 1x1 conv + depthwise 3x3 + folded-BN + ReLU.

    x_ref    : (1, H, W*Cin)      bf16  lane-dense packed input rows
    b_ref    : (3, W*Cin, W*Cout) bf16  1x1-conv x horizontal-taps x BN-scale, per ky
    s_ref    : (3, H, H)          f32   vertical-shift (zero-padded) matrices, per ky
    bias_ref : (1, W*Cout)        f32   folded BN bias
    o_ref    : (1, H, W*Cout)     f32
    """
    x0 = x_ref[0]                                            # (H, W*Cin) bf16
    acc = None
    for ky in range(3):                                      # three kernel rows
        p = jnp.dot(x0, b_ref[ky], preferred_element_type=jnp.float32)   # (H, W*Cout)
        t = jnp.dot(s_ref[ky], p, preferred_element_type=jnp.float32)    # vertical tap
        acc = t if acc is None else acc + t
    o_ref[0] = jnp.maximum(acc + bias_ref[...], 0.0)         # f32 bias + ReLU epilogue


# ----------------------------------------------------------------------------
# One-time weight prep: fold BN into weights, pack into lane-dense matrices
# ----------------------------------------------------------------------------
def prepare_lightconv3x3(params, H, W):
    w1, wdw = params["w1"], params["wdw"]              # (Cin, Cout), (3, 3, Cout)
    bn_s, bn_b = params["bn_s"], params["bn_b"]        # (Cout,), (Cout,)
    Cin, Cout = w1.shape

    wdw_f = wdw * bn_s[None, None, :]                  # BN scale folded into dw weights

    # coeff[ky, w_in, w_out, co] = wdw_f[ky, w_in - w_out + 1, co]  (zero off the band)
    wi = jnp.arange(W)[:, None]
    wo = jnp.arange(W)[None, :]
    delta = wi - wo + 1                                # (W, W)
    band = (delta >= 0) & (delta <= 2)
    coeff = jnp.where(band[None, :, :, None],
                      wdw_f[:, jnp.clip(delta, 0, 2), :], 0.0)      # (3, W, W, Cout)

    # B[ky, w_in*Cin + ci, w_out*Cout + co] = w1[ci, co] * coeff[ky, w_in, w_out, co]
    B = (w1[None, None, :, None, :] * coeff[:, :, None, :, :]
         ).reshape(3, W * Cin, W * Cout)

    # S[ky, h, r] = 1 iff r == h + ky - 1  (vertical shift with zero padding)
    h = jnp.arange(H)
    S = (h[None, None, :] == h[None, :, None] + jnp.arange(3)[:, None, None] - 1
         ).astype(jnp.float32)

    bias_p = jnp.tile(bn_b, (W,)).reshape(1, W * Cout).astype(jnp.float32)

    return {"B": B.astype(jnp.bfloat16), "S": S, "bias": bias_p}


# ----------------------------------------------------------------------------
# Forward wrapper (NCHW in / NCHW out, like the PyTorch module)
# ----------------------------------------------------------------------------
def lightconv3x3_forward(x_nchw, packed):
    N, Cin, H, W = x_nchw.shape
    WCin = W * Cin
    WCout = packed["B"].shape[2]
    Cout = WCout // W

    # NCHW -> lane-dense (N, H, W*Cin), bf16 for the MXU
    xp = jnp.transpose(x_nchw, (0, 2, 3, 1)).reshape(N, H, WCin).astype(jnp.bfloat16)

    out_p = pl.pallas_call(
        _lightconv3x3_kernel,
        out_shape=jax.ShapeDtypeStruct((N, H, WCout), jnp.float32),
        grid_spec=pltpu.PrefetchScalarGridSpec(
            num_scalar_prefetch=0,
            grid=(N,),
            in_specs=[
                pl.BlockSpec((1, H, WCin), lambda n: (n, 0, 0)),
                pl.BlockSpec((3, WCin, WCout), lambda n: (0, 0, 0)),
                pl.BlockSpec((3, H, H), lambda n: (0, 0, 0)),
                pl.BlockSpec((1, WCout), lambda n: (0, 0)),
            ],
            out_specs=pl.BlockSpec((1, H, WCout), lambda n: (n, 0, 0)),
        ),
        compiler_params=pltpu.CompilerParams(
            dimension_semantics=("parallel",)),
    )(xp, packed["B"], packed["S"], packed["bias"])

    return jnp.transpose(out_p.reshape(N, H, W, Cout), (0, 3, 1, 2))   # -> NCHW


# ----------------------------------------------------------------------------
# Pure-JAX reference (mirrors the PyTorch module, inference-mode BN)
# ----------------------------------------------------------------------------
def lightconv3x3_reference(x_nchw, params):
    w1, wdw = params["w1"], params["wdw"]
    bn_s, bn_b = params["bn_s"], params["bn_b"]
    N, Cin, H, W = x_nchw.shape
    Cout = w1.shape[1]
    x = jnp.transpose(x_nchw, (0, 2, 3, 1)).astype(jnp.float32)       # NHWC
    y = jnp.einsum("nhwi,io->nhwo", x, w1)                            # 1x1 conv (no bias)
    yp = jnp.pad(y, ((0, 0), (1, 1), (1, 1), (0, 0)))
    acc = jnp.zeros((N, H, W, Cout), jnp.float32)
    for ky in range(3):                                               # depthwise 3x3
        for kx in range(3):
            acc = acc + yp[:, ky:ky + H, kx:kx + W, :] * wdw[ky, kx, :]
    out = jnp.maximum(acc * bn_s + bn_b, 0.0)                         # BN + ReLU
    return jnp.transpose(out, (0, 3, 1, 2))


# ----------------------------------------------------------------------------
# Deterministic synthetic parameters (BN in inference form)
# ----------------------------------------------------------------------------
def init_lightconv3x3_params(key, in_c, out_c, eps=1e-5):
    ks = jax.random.split(key, 6)
    w1 = 0.1 * jax.random.normal(ks[0], (in_c, out_c), jnp.float32)
    wdw = 0.1 * jax.random.normal(ks[1], (3, 3, out_c), jnp.float32)
    gamma = 1.0 + 0.1 * jax.random.normal(ks[2], (out_c,), jnp.float32)
    beta = 0.1 * jax.random.normal(ks[3], (out_c,), jnp.float32)
    mean = 0.1 * jax.random.normal(ks[4], (out_c,), jnp.float32)
    var = 1.0 + jnp.abs(jax.random.normal(ks[5], (out_c,), jnp.float32))
    s = gamma / jnp.sqrt(var + eps)
    return {"w1": w1, "wdw": wdw, "bn_s": s, "bn_b": beta - mean * s}


# ----------------------------------------------------------------------------
if __name__ == "__main__":
    key = jax.random.PRNGKey(0)
    k_x, k_p = jax.random.split(key)

    # Small shapes consistent with the module; W * C = 8 * 16 = 128 -> lane-dense.
    N, C_IN, C_OUT, H, W = 2, 16, 16, 8, 8
    x = jax.random.normal(k_x, (N, C_IN, H, W), jnp.float32)
    params = init_lightconv3x3_params(k_p, C_IN, C_OUT)

    packed = prepare_lightconv3x3(params, H, W)        # one-time weight prep
    fwd = jax.jit(lightconv3x3_forward)
    out = jax.block_until_ready(fwd(x, packed))

    ref = lightconv3x3_reference(x, params)
    assert out.shape == (N, C_OUT, H, W), out.shape
    assert bool(jnp.all(jnp.isfinite(out)))
    assert bool(jnp.all(out >= 0.0))                   # final ReLU
    max_err = float(jnp.max(jnp.abs(out - ref)))       # bf16-matmul tolerance
    assert max_err < 5e-2, max_err
    print("KERNEL_OK")
</pallas_src>

<mosaic_0001>
module attributes {stable_mosaic.version = 11 : i64} {
  func.func @_lightconv3x3_kernel(%arg0: i32, %arg1: memref<1x8x128xbf16, #tpu.memory_space<vmem>>, %arg2: memref<3x128x128xbf16, #tpu.memory_space<vmem>>, %arg3: memref<3x8x8xf32, #tpu.memory_space<vmem>>, %arg4: memref<1x128xf32, #tpu.memory_space<vmem>>, %arg5: memref<1x8x128xf32, #tpu.memory_space<vmem>>) attributes {dimension_semantics = [#tpu.dimension_semantics<parallel>], iteration_bounds = array<i64: 2>, scalar_prefetch = 0 : i64, scratch_operands = 0 : i64, tpu.core_type = #tpu.core_type<tc>, window_params = [{transform_indices = @transform_0, window_bounds = array<i64: 1, 8, 128>}, {pipeline_mode = #tpu.pipeline_mode<synchronous>, transform_indices = @transform_1, window_bounds = array<i64: 3, 128, 128>}, {pipeline_mode = #tpu.pipeline_mode<synchronous>, transform_indices = @transform_2, window_bounds = array<i64: 3, 8, 8>}, {pipeline_mode = #tpu.pipeline_mode<synchronous>, transform_indices = @transform_3, window_bounds = array<i64: 1, 128>}, {transform_indices = @transform_4, window_bounds = array<i64: 1, 8, 128>}]} {
    %c0 = arith.constant 0 : index
    %c0_0 = arith.constant 0 : index
    %c0_1 = arith.constant 0 : index
    %0 = vector.load %arg1[%c0, %c0_0, %c0_1] : memref<1x8x128xbf16, #tpu.memory_space<vmem>>, vector<1x8x128xbf16>
    %1 = vector.shape_cast %0 : vector<1x8x128xbf16> to vector<8x128xbf16>
    %c0_2 = arith.constant 0 : index
    %c0_3 = arith.constant 0 : index
    %c0_4 = arith.constant 0 : index
    %2 = vector.load %arg2[%c0_2, %c0_3, %c0_4] : memref<3x128x128xbf16, #tpu.memory_space<vmem>>, vector<1x128x128xbf16>
    %3 = vector.shape_cast %2 : vector<1x128x128xbf16> to vector<128x128xbf16>
    %cst = arith.constant dense<0.000000e+00> : vector<8x128xf32>
    %4 = tpu.matmul %1, %3, %cst {dimension_numbers = #tpu.dot_dimension_numbers<[1], [0], [0], [1], [0, 0, 1, 1], [], []>} : vector<8x128xbf16>, vector<128x128xbf16>, vector<8x128xf32> -> vector<8x128xf32>
    %c0_5 = arith.constant 0 : index
    %c0_6 = arith.constant 0 : index
    %c0_7 = arith.constant 0 : index
    %5 = vector.load %arg3[%c0_5, %c0_6, %c0_7] : memref<3x8x8xf32, #tpu.memory_space<vmem>>, vector<1x8x8xf32>
    %6 = vector.shape_cast %5 : vector<1x8x8xf32> to vector<8x8xf32>
    %cst_8 = arith.constant dense<0.000000e+00> : vector<8x128xf32>
    %7 = tpu.matmul %6, %4, %cst_8 {dimension_numbers = #tpu.dot_dimension_numbers<[1], [0], [0], [1], [0, 0, 1, 1], [], []>} : vector<8x8xf32>, vector<8x128xf32>, vector<8x128xf32> -> vector<8x128xf32>
    %c1 = arith.constant 1 : index
    %c0_9 = arith.constant 0 : index
    %c0_10 = arith.constant 0 : index
    %8 = vector.load %arg2[%c1, %c0_9, %c0_10] : memref<3x128x128xbf16, #tpu.memory_space<vmem>>, vector<1x128x128xbf16>
    %9 = vector.shape_cast %8 : vector<1x128x128xbf16> to vector<128x128xbf16>
    %cst_11 = arith.constant dense<0.000000e+00> : vector<8x128xf32>
    %10 = tpu.matmul %1, %9, %cst_11 {dimension_numbers = #tpu.dot_dimension_numbers<[1], [0], [0], [1], [0, 0, 1, 1], [], []>} : vector<8x128xbf16>, vector<128x128xbf16>, vector<8x128xf32> -> vector<8x128xf32>
    %c1_12 = arith.constant 1 : index
    %c0_13 = arith.constant 0 : index
    %c0_14 = arith.constant 0 : index
    %11 = vector.load %arg3[%c1_12, %c0_13, %c0_14] : memref<3x8x8xf32, #tpu.memory_space<vmem>>, vector<1x8x8xf32>
    %12 = vector.shape_cast %11 : vector<1x8x8xf32> to vector<8x8xf32>
    %cst_15 = arith.constant dense<0.000000e+00> : vector<8x128xf32>
    %13 = tpu.matmul %12, %10, %cst_15 {dimension_numbers = #tpu.dot_dimension_numbers<[1], [0], [0], [1], [0, 0, 1, 1], [], []>} : vector<8x8xf32>, vector<8x128xf32>, vector<8x128xf32> -> vector<8x128xf32>
    %14 = arith.addf %7, %13 : vector<8x128xf32>
    %c2 = arith.constant 2 : index
    %c0_16 = arith.constant 0 : index
    %c0_17 = arith.constant 0 : index
    %15 = vector.load %arg2[%c2, %c0_16, %c0_17] : memref<3x128x128xbf16, #tpu.memory_space<vmem>>, vector<1x128x128xbf16>
    %16 = vector.shape_cast %15 : vector<1x128x128xbf16> to vector<128x128xbf16>
    %cst_18 = arith.constant dense<0.000000e+00> : vector<8x128xf32>
    %17 = tpu.matmul %1, %16, %cst_18 {dimension_numbers = #tpu.dot_dimension_numbers<[1], [0], [0], [1], [0, 0, 1, 1], [], []>} : vector<8x128xbf16>, vector<128x128xbf16>, vector<8x128xf32> -> vector<8x128xf32>
    %c2_19 = arith.constant 2 : index
    %c0_20 = arith.constant 0 : index
    %c0_21 = arith.constant 0 : index
    %18 = vector.load %arg3[%c2_19, %c0_20, %c0_21] : memref<3x8x8xf32, #tpu.memory_space<vmem>>, vector<1x8x8xf32>
    %19 = vector.shape_cast %18 : vector<1x8x8xf32> to vector<8x8xf32>
    %cst_22 = arith.constant dense<0.000000e+00> : vector<8x128xf32>
    %20 = tpu.matmul %19, %17, %cst_22 {dimension_numbers = #tpu.dot_dimension_numbers<[1], [0], [0], [1], [0, 0, 1, 1], [], []>} : vector<8x8xf32>, vector<8x128xf32>, vector<8x128xf32> -> vector<8x128xf32>
    %21 = arith.addf %14, %20 : vector<8x128xf32>
    %c0_23 = arith.constant 0 : index
    %c0_24 = arith.constant 0 : index
    %22 = vector.load %arg4[%c0_23, %c0_24] : memref<1x128xf32, #tpu.memory_space<vmem>>, vector<1x128xf32>
    %23 = vector.broadcast %22 : vector<1x128xf32> to vector<8x128xf32>
    %24 = arith.addf %21, %23 : vector<8x128xf32>
    %cst_25 = arith.constant 0.000000e+00 : f32
    %25 = vector.broadcast %cst_25 : f32 to vector<8x128xf32>
    %26 = arith.maximumf %24, %25 : vector<8x128xf32>
    %c0_26 = arith.constant 0 : index
    %c0_27 = arith.constant 0 : index
    %c0_28 = arith.constant 0 : index
    %27 = vector.load %arg5[%c0_26, %c0_27, %c0_28] : memref<1x8x128xf32, #tpu.memory_space<vmem>>, vector<1x8x128xf32>
    %28 = vector.shape_cast %27 : vector<1x8x128xf32> to vector<8x128xf32>
    %29 = vector.shape_cast %26 : vector<8x128xf32> to vector<1x8x128xf32>
    tpu.vector_store %arg5[%c0_26, %c0_27, %c0_28], %29 {strides = array<i32>} : memref<1x8x128xf32, #tpu.memory_space<vmem>>, vector<1x8x128xf32>,
    return
  }
  func.func @transform_0(%arg0: i32) -> (i32, i32, i32) {
    %c0_i32 = arith.constant 0 : i32
    %c0_i32_0 = arith.constant 0 : i32
    %c0_i32_1 = arith.constant 0 : i32
    return %arg0, %c0_i32, %c0_i32_0 : i32, i32, i32
  }
  func.func @transform_1(%arg0: i32) -> (i32, i32, i32) {
    %c0_i32 = arith.constant 0 : i32
    %c0_i32_0 = arith.constant 0 : i32
    %c0_i32_1 = arith.constant 0 : i32
    %c0_i32_2 = arith.constant 0 : i32
    return %c0_i32, %c0_i32_0, %c0_i32_1 : i32, i32, i32
  }
  func.func @transform_2(%arg0: i32) -> (i32, i32, i32) {
    %c0_i32 = arith.constant 0 : i32
    %c0_i32_0 = arith.constant 0 : i32
    %c0_i32_1 = arith.constant 0 : i32
    %c0_i32_2 = arith.constant 0 : i32
    return %c0_i32, %c0_i32_0, %c0_i32_1 : i32, i32, i32
  }
  func.func @transform_3(%arg0: i32) -> (i32, i32) {
    %c0_i32 = arith.constant 0 : i32
    %c0_i32_0 = arith.constant 0 : i32
    %c0_i32_1 = arith.constant 0 : i32
    return %c0_i32, %c0_i32_0 : i32, i32
  }
  func.func @transform_4(%arg0: i32) -> (i32, i32, i32) {
    %c0_i32 = arith.constant 0 : i32
    %c0_i32_0 = arith.constant 0 : i32
    %c0_i32_1 = arith.constant 0 : i32
    return %arg0, %c0_i32, %c0_i32_0 : i32, i32, i32
  }
}

</mosaic_0001>

<bundles_post_ra>
// kernel: lightconv3x3_forward.1
= control target key start
LH: loop header
LB: loop body
LE: loop exit
PB: predicated region body
PF: predicated region fallthrough
CT: control target
= control target key end

     0   :  { %s1046_s15 = smov 0   ;;  %s1197_s0 = inlined_call_operand.vmem [shape: bf16[2,8,128], index: 0, kind: input, shape index: {}]   ;;  %s1198_s1 = inlined_call_operand.vmem [shape: bf16[3,128,128], index: 1, kind: input, shape index: {}]   ;;  %s1199_s2 = inlined_call_operand.vmem [shape: f32[3,8,8], index: 2, kind: input, shape index: {}]   ;;  %s1200_s3 = inlined_call_operand.vmem [shape: f32[1,128], index: 3, kind: input, shape index: {}]   ;;  %s1201_s4 = inlined_call_operand.vmem [shape: f32[2,8,128], index: 4, kind: output, shape index: {}]  }
   0x1 LB: > { %s798_s16 = sadd.s32 4294967295, %s1017_s15   ;;  %p802_p0 = scmp.ge.s32.totalorder %s1017_s15, 1  ;;  %s1017_s15 = sphi %s1046_s15, %s14_s15  }
   0x2   : > { %p161_p1 = scmp.lt.s32.totalorder %s1017_s15, 3 }
   0x4   : > { %p162_p2 = pnand %p802_p0, %p161_p1 }
   0x5   : > { %v987_v0 = vld [vmem:[%s1198_s1] sm:$0xff] (!%p162_p2)   ;;  %v1019_v1 = vmov (!%p162_p2), 0.0   ;;  %v989_v3 = vld [vmem:[%s1198_s1 + $0x8] sm:$0xff] (!%p162_p2)   ;;  %vm1020_vm0 = vmmov (!%p162_p2), 0   ;;  %v991_v5 = vld [vmem:[%s1198_s1 + $0x10] sm:$0xff] (!%p162_p2)   ;;  %p185_p3 = scmp.lt.s32.totalorder (!%p162_p2), %s798_s16, 1 }
   0x6   : > { %165 = sbr.rel (%p162_p2) target bundleno = 502 (0x1f6), region = 36  ;;  %902 = vmatprep.subr.bf16.mxu0 (!%p162_p2), %v1019_v1  ;;  %922 = vmatprep.subr.bf16.mxu1 (!%p162_p2), %v1019_v1  ;;  %v988_v2 = vld [vmem:[%s1198_s1 + $0x40] sm:$0xff] (!%p162_p2)   ;;  %v990_v4 = vld [vmem:[%s1198_s1 + $0x48] sm:$0xff] (!%p162_p2)   ;;  %v992_v6 = vld [vmem:[%s1198_s1 + $0x50] sm:$0xff] (!%p162_p2)   ;;  %vm407_vm1 = vcmask (!%p162_p2), 64512  }
   0x7   : > { %903 = vmatpush3.bf16.msra.mxu0 (!%p162_p2), %v987_v0  ;;  %918 = vmatprep.mubr.msk.bf16.mxu0 (!%p162_p2), %vm1020_vm0, %v1019_v1  ;;  %v993_v7 = vld [vmem:[%s1198_s1 + $0x18] sm:$0xff] (!%p162_p2)   ;;  %v995_v9 = vld [vmem:[%s1198_s1 + $0x20] sm:$0xff] (!%p162_p2)   ;;  %v997_v11 = vld [vmem:[%s1198_s1 + $0x28] sm:$0xff] (!%p162_p2)  }
   0x8   : > { %923 = vmatpush3.bf16.msra.mxu1 (!%p162_p2), %v988_v2  ;;  %904 = vmatprep.subr.bf16.mxu0 (!%p162_p2), %v1019_v1  ;;  %v994_v8 = vld [vmem:[%s1198_s1 + $0x58] sm:$0xff] (!%p162_p2)   ;;  %v996_v10 = vld [vmem:[%s1198_s1 + $0x60] sm:$0xff] (!%p162_p2)   ;;  %v998_v12 = vld [vmem:[%s1198_s1 + $0x68] sm:$0xff] (!%p162_p2)  }
   0x9   : > { %924 = vmatprep.subr.bf16.mxu1 (!%p162_p2), %v1019_v1  ;;  %938 = vmatprep.mubr.msk.bf16.mxu1 (!%p162_p2), %vm1020_vm0, %v1019_v1  ;;  %v999_v13 = vld [vmem:[%s1198_s1 + $0x30] sm:$0xff] (!%p162_p2)   ;;  %v1001_v15 = vld [vmem:[%s1198_s1 + $0x38] sm:$0xff] (!%p162_p2)   ;;  %v1003_v18 = vld [vmem:[%s1198_s1 + $0x80] sm:$0xff] (!%p162_p2)  }
   0xa   : > { %v1000_v14 = vld [vmem:[%s1198_s1 + $0x70] sm:$0xff] (!%p162_p2)   ;;  %v1002_v16 = vld [vmem:[%s1198_s1 + $0x78] sm:$0xff] (!%p162_p2)   ;;  %v1004_v19 = vld [vmem:[%s1198_s1 + $0x88] sm:$0xff] (!%p162_p2)  }
   0xb   : > { %905 = vmatpush3.bf16.msra.mxu0 (!%p162_p2), %v989_v3  ;;  %v1005_v20 = vld [vmem:[%s1198_s1 + $0x90] sm:$0xff] (!%p162_p2)   ;;  %v1006_v21 = vld [vmem:[%s1198_s1 + $0x98] sm:$0xff] (!%p162_p2)   ;;  %v1007_v22 = vld [vmem:[%s1198_s1 + $0xa0] sm:$0xff] (!%p162_p2)  }
   0xc   : > { %925 = vmatpush3.bf16.msra.mxu1 (!%p162_p2), %v990_v4  ;;  %906 = vmatprep.subr.bf16.mxu0 (!%p162_p2), %v1019_v1  ;;  %v1008_v23 = vld [vmem:[%s1198_s1 + $0xa8] sm:$0xff] (!%p162_p2)   ;;  %v1009_v24 = vld [vmem:[%s1198_s1 + $0xb0] sm:$0xff] (!%p162_p2)   ;;  %v1010_v25 = vld [vmem:[%s1198_s1 + $0xb8] sm:$0xff] (!%p162_p2)  }
   0xd   : > { %926 = vmatprep.subr.bf16.mxu1 %v1019_v1  ;;  %s1203_s16 = smov (!%p185_p3, %s798_s16), 1  ;;  %v837_v27 = vld [vmem:[%s1199_s2 + $0x8] sm:$0xff]  ;;  %v299_v35 = vld [vmem:[%s1199_s2] sm:$0xff]  ;;  %v864_v36 = vld [vmem:[%s1199_s2 + $0x10] sm:$0xff] }
   0xe   : > { %s803_s21 = sshll.u32 %s1203_s16, 2  ;;  %v866_v47 = vld [vmem:[%s1200_s3] ss:$0 sm:$0xff]  ;;  %s804_s29 = sshll.u32 %s1203_s16, 3 }
   0xf   : > { %907 = vmatpush3.bf16.msra.mxu0 %v991_v5  ;;  %s188_s28 = scalar_lea.vmem %s1197_s0, %s803_s21  ;;  %s192_s6 = scalar_lea.vmem %s1201_s4, %s804_s29 }
  0x10   : > { %927 = vmatpush3.bf16.msra.mxu1 %v992_v6  ;;  %908 = vmatprep.subr.bf16.mxu0 %v1019_v1  ;;  %v194_v17 = vld [vmem:[%s188_s28] sm:$0xf] }
  0x11   : > { %928 = vmatprep.subr.bf16.mxu1 %v1019_v1 }
  0x13   : > { %909 = vmatpush3.bf16.msra.mxu0 %v993_v7 }
  0x14   : > { %929 = vmatpush3.bf16.msra.mxu1 %v994_v8  ;;  %910 = vmatprep.subr.bf16.mxu0 %v1019_v1 }
  0x15   : > { %930 = vmatprep.subr.bf16.mxu1 %v1019_v1 }
  0x17   : > { %911 = vmatpush3.bf16.msra.mxu0 %v995_v9 }
  0x18   : > { %931 = vmatpush3.bf16.msra.mxu1 %v996_v10  ;;  %912 = vmatprep.subr.bf16.mxu0 %v1019_v1 }
  0x19   : > { %932 = vmatprep.subr.bf16.mxu1 %v1019_v1 }
  0x1b   : > { %913 = vmatpush3.bf16.msra.mxu0 %v997_v11 }
  0x1c   : > { %933 = vmatpush3.bf16.msra.mxu1 %v998_v12  ;;  %914 = vmatprep.subr.bf16.mxu0 %v1019_v1 }
  0x1d   : > { %934 = vmatprep.subr.bf16.mxu1 %v1019_v1 }
  0x1f   : > { %915 = vmatpush3.bf16.msra.mxu0 %v999_v13 }
  0x20   : > { %935 = vmatpush3.bf16.msra.mxu1 %v1000_v14  ;;  %916 = vmatprep.subr.bf16.mxu0 %v1019_v1 }
  0x21   : > { %936 = vmatprep.subr.bf16.mxu1 %v1019_v1 }
  0x23   : > { %917 = vmatpush3.bf16.msra.mxu0 %v1001_v15 }
  0x24   : > { %937 = vmatpush3.bf16.msra.mxu1 %v1002_v16  ;;  %952 = vmatprep.subr.bf16.mxu0 %v1019_v1 }
  0x25   : > { %942 = vmatprep.subr.mxu1 %v1019_v1 }
  0x26   : > { %919 = vmatmul.mubr.bf16.vlgmr.msra.gmra.mrb[0].mxu0 %v194_v17 }
  0x27   : > { %939 = vmatmul.mubr.bf16.vlgmr.msra.gmra.mrb[0].mxu1 %v194_v17  ;;  %953 = vmatpush3.bf16.msra.mxu0 %v1003_v18 }
  0x28   : > { %954 = vmatprep.subr.bf16.mxu0 %v1019_v1  ;;  %968 = vmatprep.mubr.msk.bf16.mxu0 %vm1020_vm0, %v1019_v1 }
  0x29   : > { %944 = vmatprep.mubr.msk.f32.mxu1 %vm1020_vm0, %v1019_v1 }
  0x2b   : > { %955 = vmatpush3.bf16.msra.mxu0 %v1004_v19 }
  0x2c   : > { %956 = vmatprep.subr.bf16.mxu0 %v1019_v1 }
  0x2f   : > { %957 = vmatpush3.bf16.msra.mxu0 %v1005_v20 }
  0x30   : > { %958 = vmatprep.subr.bf16.mxu0 %v1019_v1 }
  0x33   : > { %959 = vmatpush3.bf16.msra.mxu0 %v1006_v21 }
  0x34   : > { %960 = vmatprep.subr.bf16.mxu0 %v1019_v1 }
  0x37   : > { %961 = vmatpush3.bf16.msra.mxu0 %v1007_v22 }
  0x38   : > { %962 = vmatprep.subr.bf16.mxu0 %v1019_v1 }
  0x3b   : > { %963 = vmatpush3.bf16.msra.mxu0 %v1008_v23 }
  0x3c   : > { %964 = vmatprep.subr.bf16.mxu0 %v1019_v1 }
  0x3f   : > { %965 = vmatpush3.bf16.msra.mxu0 %v1009_v24 }
  0x40   : > { %966 = vmatprep.subr.bf16.mxu0 %v1019_v1 }
  0x43   : > { %967 = vmatpush3.bf16.msra.mxu0 %v1010_v25 }
  0x46   : > { %969 = vmatmul.mubr.bf16.vlgmr.msra.gmra.mrb[4].mxu0 %v194_v17 }
  0xf9   : > { %v293_v26 = vpop.f32.mrb[0].mxu0 }
  0xfa   : > { %v399_v28 = vpop.f32.mrb[0].mxu1  ;;  %v920_v29 = vpop.f32.mrb[1].mxu0 }
  0xfb   : > { %943 = vmatpush3.msra.mxu1 %v399_v28  ;;  %v296_v30 = vpop.f32.mrb[2].mxu0  ;;  %v940_v31 = vpop.f32.mrb[1].mxu1 }
  0xfc   : > { %947 = vmatprep.subr.mxu1 %v1019_v1  ;;  %v921_v32 = vpop.f32.mrb[3].mxu0  ;;  %945 = vmatmul.mubr.msk.f32.vlgmr.msra.gmra.mrb[4].mxu1 %vm407_vm1, %v837_v27  ;;  %v402_v33 = vpop.f32.mrb[2].mxu1 }
  0xfd   : > { %948 = vmatpush3.msra.mxu1 %v293_v26  ;;  %v941_v34 = vpop.f32.mrb[3].mxu1  ;;  %949 = vmatprep.mubr.msk.f32.mxu1 %vm1020_vm0, %v1019_v1 }
  0xfe   : > { %972 = vmatprep.subr.mxu1 %v1019_v1 }
 0x100   : > { %950 = vmatmul.mubr.msk.f32.vlgmr.msra.gmra.mrb[6].mxu1 %vm407_vm1, %v299_v35 }
 0x101   : > { %974 = vmatprep.mubr.msk.f32.mxu1 %vm1020_vm0, %v1019_v1 }
 0x119   : > { %v653_v37 = vpop.f32.mrb[4].mxu0 }
 0x11a   : > { %v970_v38 = vpop.f32.mrb[5].mxu0  ;;  %973 = vmatpush3.msra.mxu1 %v653_v37 }
 0x11b   : > { %v656_v39 = vpop.f32.mrb[6].mxu0  ;;  %975 = vmatmul.mubr.msk.f32.vlgmr.msra.gmra.mrb[8].mxu1 %vm407_vm1, %v864_v36 }
 0x11c   : > { %v971_v40 = vpop.f32.mrb[7].mxu0 }
 0x1cf   : > { %v477_v41 = vpop.f32.mrb[4].mxu1 }
 0x1d0   : > { %v946_v42 = vpop.f32.mrb[5].mxu1 }
 0x1d3   : > { %v550_v43 = vpop.f32.mrb[6].mxu1 }
 0x1d4   : > { %v551_v44 = vadd.f32 %v550_v43, %v477_v41  ;;  %v951_v45 = vpop.f32.mrb[7].mxu1 }
 0x1ee   : > { %v730_v46 = vpop.f32.mrb[8].mxu1 }
 0x1ef   : > { %v734_v48 = vadd.f32 %v730_v46, %v551_v44  ;;  %v976_v49 = vpop.f32.mrb[9].mxu1 }
 0x1f1   : > { %v742_v50 = vadd.f32 %v866_v47, %v734_v48 }
 0x1f3   : > { %v743_v51 = vmax.f32 %v742_v50, 0.0 }
 0x1f5   : > { %744 = vst [vmem:[%s192_s6] sm:$0xff] %v743_v51 }
 0x1f6 PF: > { %s14_s15 = sadd.s32 1, %s1017_s15  }
 0x1f7   : > { %p11_p4 = scmp.ge.s32.totalorder %s14_s15, 4  }
 0x1f9   :  { %13 = sbr.rel (!%p11_p4) target bundleno = 1 (0x1), region = 70 }

</bundles_post_ra>
